<compile_context>
chip_gen: v6e
topology: v6e:2x2x1
jax: 0.10.0
libtpu: 0.0.40
codegen_flags: <defaults>
</compile_context>

<pallas_src>
import jax
import jax.numpy as jnp
from jax.experimental import pallas as pl
from jax.experimental.pallas import tpu as pltpu


def _round_up(x, m):
    return ((x + m - 1) // m) * m


def _mlp_kernel(x_ref, w_ref, b_ref, o_ref, acc_ref):
    # x_ref: (tm, tk)  w_ref: (tn, tk)  b_ref: (1, tn)
    # o_ref: (tm, tn)  acc_ref: (tm, tn) f32 scratch (persists across K steps)
    k = pl.program_id(2)

    @pl.when(k == 0)
    def _():
        acc_ref[...] = jnp.zeros_like(acc_ref)

    # bf16 MXU inputs, f32 accumulation. Contract the K dim of both operands
    # (dim 1 of x tile and dim 1 of the (N, K)-layout weight tile) so the
    # weight never needs a wrapper-side transpose.
    x_t = x_ref[...].astype(jnp.bfloat16)
    w_t = w_ref[...].astype(jnp.bfloat16)
    acc_ref[...] += jax.lax.dot_general(
        x_t, w_t,
        dimension_numbers=(((1,), (1,)), ((), ())),
        preferred_element_type=jnp.float32)

    # Epilogue: add bias once and write the (lane-dense) output tile.
    @pl.when(k == pl.num_programs(2) - 1)
    def _():
        o_ref[...] = (acc_ref[...] + b_ref[...]).astype(o_ref.dtype)


def mlp_layer(x, weight, bias, *, tm_max=256, tn_max=256, tk_max=512):
    """y = x @ weight.T + bias, matching torch.nn.Linear.

    x:      (M, K)  float32
    weight: (N, K)  float32  (PyTorch [out_features, in_features]; used as-is)
    bias:   (N,)    float32
    """
    M, K = x.shape
    N, K2 = weight.shape
    assert K == K2, "weight in_features must match x features"

    # Lane-dense, MXU-friendly tiles; clamp for small problems.
    tm = min(tm_max, _round_up(M, 8))
    tn = min(tn_max, _round_up(N, 128))
    tk = min(tk_max, _round_up(K, 128))

    Mp = _round_up(M, tm)
    Np = _round_up(N, tn)
    Kp = _round_up(K, tk)

    # Zero padding keeps the matmul + bias add exact; padded rows/cols are
    # sliced off at the end.
    xp = x if (Mp == M and Kp == K) else jnp.pad(x, ((0, Mp - M), (0, Kp - K)))
    wp = weight if (Np == N and Kp == K) else jnp.pad(
        weight, ((0, Np - N), (0, Kp - K)))
    bp = bias.reshape(1, N)
    if Np != N:
        bp = jnp.pad(bp, ((0, 0), (0, Np - N)))

    grid = (Mp // tm, Np // tn, Kp // tk)

    cost = pl.CostEstimate(
        flops=2 * Mp * Np * Kp,
        transcendentals=0,
        bytes_accessed=4 * (Mp * Kp + Np * Kp + Np + Mp * Np),
    )

    yp = pl.pallas_call(
        _mlp_kernel,
        out_shape=jax.ShapeDtypeStruct((Mp, Np), x.dtype),
        grid_spec=pltpu.PrefetchScalarGridSpec(
            num_scalar_prefetch=0,
            grid=grid,
            in_specs=[
                pl.BlockSpec((tm, tk), lambda i, j, k: (i, k)),  # x tile
                pl.BlockSpec((tn, tk), lambda i, j, k: (j, k)),  # W tile (N,K)
                pl.BlockSpec((1, tn), lambda i, j, k: (0, j)),   # bias tile
            ],
            out_specs=pl.BlockSpec((tm, tn), lambda i, j, k: (i, j)),
            scratch_shapes=[pltpu.VMEM((tm, tn), jnp.float32)],
        ),
        compiler_params=pltpu.CompilerParams(
            dimension_semantics=("parallel", "parallel", "arbitrary")),
        cost_estimate=cost,
    )(xp, wp, bp)

    return yp[:M, :N]


if __name__ == "__main__":
    # Module: MLPLayer(in_dim, out_dim) -> nn.Linear(in_dim*2, out_dim)
    in_dim, out_dim = 16, 32
    in_features = in_dim * 2          # 32
    batch = 8

    key = jax.random.PRNGKey(0)
    kx, kw, kb = jax.random.split(key, 3)

    x = jax.random.normal(kx, (batch, in_features), dtype=jnp.float32)
    # Deterministic synthetic parameters (PyTorch shapes: weight [out, in], bias [out]).
    bound = 1.0 / (in_features ** 0.5)
    weight = jax.random.uniform(kw, (out_dim, in_features), jnp.float32, -bound, bound)
    bias = jax.random.uniform(kb, (out_dim,), jnp.float32, -bound, bound)

    y = mlp_layer(x, weight, bias)
    y = jax.block_until_ready(y)

    # Reference check in plain JAX (bf16 MXU inputs + f32 accumulation ->
    # slightly looser tolerance than pure-f32).
    y_ref = x @ weight.T + bias
    assert y.shape == (batch, out_dim)
    assert jnp.allclose(y, y_ref, atol=2e-2, rtol=2e-2), float(
        jnp.max(jnp.abs(y - y_ref)))

    print("KERNEL_OK")
</pallas_src>

<mosaic_0001>
module attributes {stable_mosaic.version = 11 : i64} {
  func.func @_mlp_kernel(%arg0: i32, %arg1: i32, %arg2: i32, %arg3: memref<8x128xf32, #tpu.memory_space<vmem>>, %arg4: memref<128x128xf32, #tpu.memory_space<vmem>>, %arg5: memref<1x128xf32, #tpu.memory_space<vmem>>, %arg6: memref<8x128xf32, #tpu.memory_space<vmem>>, %arg7: memref<8x128xf32, #tpu.memory_space<vmem>>) attributes {dimension_semantics = [#tpu.dimension_semantics<parallel>, #tpu.dimension_semantics<parallel>, #tpu.dimension_semantics<arbitrary>], iteration_bounds = array<i64: 1, 1, 1>, scalar_prefetch = 0 : i64, scratch_operands = 1 : i64, tpu.core_type = #tpu.core_type<tc>, window_params = [{transform_indices = @transform_0, window_bounds = array<i64: 8, 128>}, {transform_indices = @transform_1, window_bounds = array<i64: 128, 128>}, {transform_indices = @transform_2, window_bounds = array<i64: 1, 128>}, {transform_indices = @transform_3, window_bounds = array<i64: 8, 128>}]} {
    %c0_i32 = arith.constant 0 : i32
    %0 = arith.cmpi eq, %arg2, %c0_i32 : i32
    %1 = arith.extui %0 : i1 to i32
    %c0_i32_0 = arith.constant 0 : i32
    %2 = arith.cmpi ne, %1, %c0_i32_0 : i32
    scf.if %2 {
      %cst_10 = arith.constant 0.000000e+00 : f32
      %14 = vector.broadcast %cst_10 : f32 to vector<8x128xf32>
      %c0_11 = arith.constant 0 : index
      %c0_12 = arith.constant 0 : index
      %15 = vector.load %arg7[%c0_11, %c0_12] : memref<8x128xf32, #tpu.memory_space<vmem>>, vector<8x128xf32>
      tpu.vector_store %arg7[%c0_11, %c0_12], %14 {strides = array<i32>} : memref<8x128xf32, #tpu.memory_space<vmem>>, vector<8x128xf32>,
    } else {
    }
    %c0 = arith.constant 0 : index
    %c0_1 = arith.constant 0 : index
    %3 = vector.load %arg3[%c0, %c0_1] : memref<8x128xf32, #tpu.memory_space<vmem>>, vector<8x128xf32>
    %4 = arith.truncf %3 : vector<8x128xf32> to vector<8x128xbf16>
    %c0_2 = arith.constant 0 : index
    %c0_3 = arith.constant 0 : index
    %5 = vector.load %arg4[%c0_2, %c0_3] : memref<128x128xf32, #tpu.memory_space<vmem>>, vector<128x128xf32>
    %6 = arith.truncf %5 : vector<128x128xf32> to vector<128x128xbf16>
    %c0_4 = arith.constant 0 : index
    %c0_5 = arith.constant 0 : index
    %7 = vector.load %arg7[%c0_4, %c0_5] : memref<8x128xf32, #tpu.memory_space<vmem>>, vector<8x128xf32>
    %cst = arith.constant dense<0.000000e+00> : vector<8x128xf32>
    %8 = tpu.matmul %4, %6, %cst {dimension_numbers = #tpu.dot_dimension_numbers<[1], [1], [0], [0], [0, 0, 1, 0], [], []>} : vector<8x128xbf16>, vector<128x128xbf16>, vector<8x128xf32> -> vector<8x128xf32>
    %9 = arith.addf %7, %8 : vector<8x128xf32>
    %c0_6 = arith.constant 0 : index
    %c0_7 = arith.constant 0 : index
    %10 = vector.load %arg7[%c0_6, %c0_7] : memref<8x128xf32, #tpu.memory_space<vmem>>, vector<8x128xf32>
    tpu.vector_store %arg7[%c0_6, %c0_7], %9 {strides = array<i32>} : memref<8x128xf32, #tpu.memory_space<vmem>>, vector<8x128xf32>,
    %c0_i32_8 = arith.constant 0 : i32
    %11 = arith.cmpi eq, %arg2, %c0_i32_8 : i32
    %12 = arith.extui %11 : i1 to i32
    %c0_i32_9 = arith.constant 0 : i32
    %13 = arith.cmpi ne, %12, %c0_i32_9 : i32
    scf.if %13 {
      %c0_10 = arith.constant 0 : index
      %c0_11 = arith.constant 0 : index
      %14 = vector.load %arg7[%c0_10, %c0_11] : memref<8x128xf32, #tpu.memory_space<vmem>>, vector<8x128xf32>
      %c0_12 = arith.constant 0 : index
      %c0_13 = arith.constant 0 : index
      %15 = vector.load %arg5[%c0_12, %c0_13] : memref<1x128xf32, #tpu.memory_space<vmem>>, vector<1x128xf32>
      %16 = vector.broadcast %15 : vector<1x128xf32> to vector<8x128xf32>
      %17 = arith.addf %14, %16 : vector<8x128xf32>
      %c0_14 = arith.constant 0 : index
      %c0_15 = arith.constant 0 : index
      %18 = vector.load %arg6[%c0_14, %c0_15] : memref<8x128xf32, #tpu.memory_space<vmem>>, vector<8x128xf32>
      tpu.vector_store %arg6[%c0_14, %c0_15], %17 {strides = array<i32>} : memref<8x128xf32, #tpu.memory_space<vmem>>, vector<8x128xf32>,
    } else {
    }
    return
  }
  func.func @transform_0(%arg0: i32, %arg1: i32, %arg2: i32) -> (i32, i32) {
    %c0_i32 = arith.constant 0 : i32
    return %arg0, %arg2 : i32, i32
  }
  func.func @transform_1(%arg0: i32, %arg1: i32, %arg2: i32) -> (i32, i32) {
    %c0_i32 = arith.constant 0 : i32
    return %arg1, %arg2 : i32, i32
  }
  func.func @transform_2(%arg0: i32, %arg1: i32, %arg2: i32) -> (i32, i32) {
    %c0_i32 = arith.constant 0 : i32
    %c0_i32_0 = arith.constant 0 : i32
    return %c0_i32, %arg1 : i32, i32
  }
  func.func @transform_3(%arg0: i32, %arg1: i32, %arg2: i32) -> (i32, i32) {
    %c0_i32 = arith.constant 0 : i32
    return %arg0, %arg1 : i32, i32
  }
}

</mosaic_0001>

<bundles_post_ra>
// kernel: tpu_custom_call.1
= control target key start
LH: loop header
LB: loop body
LE: loop exit
PB: predicated region body
PF: predicated region fallthrough
CT: control target
= control target key end

     0   :  { %8 = vsyncpa [#allocation4], 0  ;;  %s287_s0 = inlined_call_operand.hbm [shape: f32[8,128], index: 0, kind: input, shape index: {}]   ;;  %s288_s1 = inlined_call_operand.hbm [shape: f32[128,128], index: 1, kind: input, shape index: {}]   ;;  %s289_s2 = inlined_call_operand.vmem [shape: f32[1,128], index: 2, kind: input, shape index: {}]   ;;  %s290_s3 = inlined_call_operand.hbm [shape: f32[8,128], index: 3, kind: output, shape index: {}]  }
   0x1   :  { %9 = vsyncpa [#allocation7], 0 }
   0x2   :  { %10 = vsyncpa [#allocation5], 0  ;;  %s248_s12 = smov [#allocation3]   ;;  %s249_s14 = smov [#allocation6]  }
   0x3   :  { %s17_s13 = sshll.u32 %s248_s12, 4  ;;  %s26_s15 = sshll.u32 %s249_s14, 4  ;;  %s18_s13 = int_to_ptr.vmem [resolvable:$true] %s17_s13  ;;  %s27_s15 = int_to_ptr.vmem [resolvable:$true] %s26_s15 }
   0x4   :  { %s190_s16 = scalar_lea.vmem %s18_s13, 128  ;;  %p195_p1 = scmp.lt.s32.totalorder %s18_s13, %s18_s13 }
   0x5   :  { %p191_p0 = scmp.ne.s32.totalorder %s18_s13, %s190_s16  ;;  %p196_p2 = scmp.lt.s32.totalorder %s190_s16, %s190_s16 }
   0x7   :  { %p197_p3 = por %p196_p2, %p195_p1 }
   0x9   :  { %p198_p4 = pnand %p197_p3, %p191_p0 }
   0xb   :  { %201 = shalt.err (!%p198_p4)
}
   0xc   :  { %20 = dma.hbm_to_vmem [thread:$0]  %s287_s0, 128, %s18_s13, [#allocation4]  }
   0xd   :  { %s210_s19 = scalar_lea.vmem %s27_s15, 2048  ;;  %p215_p6 = scmp.lt.s32.totalorder %s27_s15, %s27_s15 }
   0xe   :  { %p211_p5 = scmp.ne.s32.totalorder %s27_s15, %s210_s19  ;;  %p216_p7 = scmp.lt.s32.totalorder %s210_s19, %s210_s19 }
  0x10   :  { %p217_p8 = por %p216_p7, %p215_p6 }
  0x12   :  { %p218_p9 = pnand %p217_p8, %p211_p5 }
  0x14   :  { %221 = shalt.err (!%p218_p9)
}
  0x15   :  { %s250_s20 = smov 128   ;;  %s251_s21 = smov 8  }
  0x16   :  { %32 = dma.hbm_to_vmem [thread:$0]  %s288_s1, 2048, %s27_s15, [#allocation7], %s250_s20, %s250_s20, %s251_s21  }
  0x17   :  { %242 = dma.done.wait [#allocation4], 128  }
  0x18   :  { %243 = vsyncadd [#allocation4], 4294967168 }
  0x19   :  { %244 = dma.done.wait [#allocation7], 2048  }
  0x1a   :  { %245 = vsyncadd [#allocation7], 4294965248  ;;  %v252_v0 = vmov 0.0   ;;  %vm253_vm0 = vmmov 0   ;;  %v63_v1 = vld [vmem:[#allocation6 + $0x70] sm:$0xff]  ;;  %v64_v2 = vld [vmem:[#allocation6 + $0x78] sm:$0xff] }
  0x1b   :  { %155 = vmatprep.subr.bf16.mxu0 %v252_v0  ;;  %171 = vmatprep.mubr.msk.bf16.mxu0 %vm253_vm0, %v252_v0  ;;  %v72_v3 = vpack.c.bf16 %v64_v2, %v63_v1  ;;  %v61_v4 = vld [vmem:[#allocation6 + $0x60] sm:$0xff]  ;;  %v62_v5 = vld [vmem:[#allocation6 + $0x68] sm:$0xff]  ;;  %v59_v7 = vld [vmem:[#allocation6 + $0x50] sm:$0xff]  ;;  %s254_s24 = smov [#allocation8]  }
  0x1c   :  { %v71_v6 = vpack.c.bf16 %v62_v5, %v61_v4  ;;  %v60_v8 = vld [vmem:[#allocation6 + $0x58] sm:$0xff]  ;;  %v57_v10 = vld [vmem:[#allocation6 + $0x40] sm:$0xff]  ;;  %v58_v11 = vld [vmem:[#allocation6 + $0x48] sm:$0xff]  ;;  %s135_s25 = sshll.u32 %s254_s24, 4  ;;  %s136_s25 = int_to_ptr.vmem [resolvable:$true] %s135_s25 }
  0x1d   :  { %156 = vmatpush3.bf16.xpose.msra.mxu0 %v72_v3  ;;  %v70_v9 = vpack.c.bf16 %v60_v8, %v59_v7  ;;  %v69_v12 = vpack.c.bf16 %v58_v11, %v57_v10  ;;  %v55_v13 = vld [vmem:[#allocation6 + $0x30] sm:$0xff]  ;;  %v56_v14 = vld [vmem:[#allocation6 + $0x38] sm:$0xff]  ;;  %v53_v16 = vld [vmem:[#allocation6 + $0x20] sm:$0xff]  ;;  %s222_s26 = scalar_lea.vmem %s136_s25, 128  ;;  %p227_p11 = scmp.lt.s32.totalorder %s136_s25, %s136_s25 }
  0x1e   :  { %157 = vmatprep.subr.bf16.mxu0 %v252_v0  ;;  %v68_v15 = vpack.c.bf16 %v56_v14, %v55_v13  ;;  %v54_v17 = vld [vmem:[#allocation6 + $0x28] sm:$0xff]  ;;  %v51_v19 = vld [vmem:[#allocation6 + $0x10] sm:$0xff]  ;;  %v52_v20 = vld [vmem:[#allocation6 + $0x18] sm:$0xff]  ;;  %p223_p10 = scmp.ne.s32.totalorder %s136_s25, %s222_s26  ;;  %p228_p12 = scmp.lt.s32.totalorder %s222_s26, %s222_s26 }
  0x1f   :  { %v67_v18 = vpack.c.bf16 %v54_v17, %v53_v16  ;;  %v66_v21 = vpack.c.bf16 %v52_v20, %v51_v19  ;;  %v49_v22 = vld [vmem:[#allocation6] sm:$0xff]  ;;  %v50_v23 = vld [vmem:[#allocation6 + $0x8] sm:$0xff]  ;;  %v47_v25 = vld [vmem:[#allocation3] sm:$0xff] }
  0x20   :  { %v65_v24 = vpack.c.bf16 %v50_v23, %v49_v22  ;;  %v48_v26 = vpack.c.bf16 %v47_v25, %v47_v25  ;;  %v145_v27 = vld [vmem:[%s289_s2] ss:$0 sm:$0xff]  ;;  %p229_p13 = por %p228_p12, %p227_p11 }
  0x22   :  { %p230_p0 = pnand %p229_p13, %p223_p10 }
  0x25   :  { %158 = vmatpush3.bf16.xpose.msra.mxu0 %v71_v6 }
  0x26   :  { %159 = vmatprep.subr.bf16.mxu0 %v252_v0 }
  0x2d   :  { %160 = vmatpush3.bf16.xpose.msra.mxu0 %v70_v9 }
  0x2e   :  { %161 = vmatprep.subr.bf16.mxu0 %v252_v0 }
  0x35   :  { %162 = vmatpush3.bf16.xpose.msra.mxu0 %v69_v12 }
  0x36   :  { %163 = vmatprep.subr.bf16.mxu0 %v252_v0 }
  0x3d   :  { %164 = vmatpush3.bf16.xpose.msra.mxu0 %v68_v15 }
  0x3e   :  { %165 = vmatprep.subr.bf16.mxu0 %v252_v0 }
  0x45   :  { %166 = vmatpush3.bf16.xpose.msra.mxu0 %v67_v18 }
  0x46   :  { %167 = vmatprep.subr.bf16.mxu0 %v252_v0 }
  0x4d   :  { %168 = vmatpush3.bf16.xpose.msra.mxu0 %v66_v21 }
  0x4e   :  { %169 = vmatprep.subr.bf16.mxu0 %v252_v0 }
  0x55   :  { %170 = vmatpush3.bf16.xpose.msra.mxu0 %v65_v24 }
  0x5c   :  { %172 = vmatmul.mubr.bf16.vlgmr.msra.gmra.mxu0 %v48_v26 }
 0x11c   :  { %v108_v28 = vpop.f32.mrf.mxu0 }
 0x11d   :  { %v127_v29 = vadd.f32 %v145_v27, %v108_v28 }
 0x11e   :  { %v173_v30 = vpop.f32.mrf.mxu0 }
 0x11f   :  { %128 = vst [vmem:[#allocation8] sm:$0xff] %v127_v29 }
 0x120   :  { %v111_v31 = vpop.f32.mrf.mxu0 }
 0x121   :  { %233 = shalt.err (!%p230_p0)
}
 0x122   :  { %138 = dma.vmem_to_hbm [thread:$0]  %s136_s25, 128, %s290_s3, [#allocation5]   ;;  %v174_v32 = vpop.f32.mrf.mxu0 }
 0x123   :  { %246 = dma.done.wait [#allocation5], 128  }
 0x124   :  { %247 = vsyncadd [#allocation5], 4294967168 }
 0x125   :  { %142 = vsyncpa [#allocation4], 1 }
 0x126   :  { %143 = vsyncpa [#allocation7], 1 }
 0x127   :  { %144 = vsyncpa [#allocation5], 1 }

</bundles_post_ra>
